<compile_context>
chip_gen: v7x
topology: tpu7x:2x2x1
jax: 0.10.0
libtpu: 0.0.40
codegen_flags: <defaults>
</compile_context>

<pallas_src>
import jax
import jax.numpy as jnp
from jax.experimental import pallas as pl
from jax.experimental.pallas import tpu as pltpu


def _cdiv(a, b):
    return (a + b - 1) // b


def _round_up(a, m):
    return _cdiv(a, m) * m


def _is_multicore_chip():
    # v7x has 2 TensorCores per chip; v5e/v6e have 1.  Detection failure -> treat as 1.
    try:
        kind = jax.devices()[0].device_kind.lower()
        return "v7" in kind
    except Exception:
        return False


def _default_vmem_limit():
    """Generation-aware scoped-VMEM limit: ~3/4 of physical, capped at 96 MiB."""
    cap = None
    try:
        info = pltpu.get_tpu_info()
        cap = int(getattr(info, "vmem_capacity_bytes", 0)) or None
    except Exception:
        cap = None
    if cap is None:
        kind = ""
        try:
            kind = jax.devices()[0].device_kind.lower()
        except Exception:
            pass
        if ("v5" in kind) or ("v6" in kind):
            cap = 128 * 1024 * 1024
        else:
            cap = 64 * 1024 * 1024        # conservative default (v7x per-TC VMEM)
    return min(96 * 1024 * 1024, (cap * 3) // 4)


def biasfree_layernorm(x, weight, *, tile_rows=None, vmem_limit_bytes=None):
    """x: (..., C), weight: (C,). Returns x / sqrt(var(x,-1,biased) + 1e-5) * weight."""
    orig_shape = x.shape
    C = int(orig_shape[-1])
    assert weight.shape == (C,)

    rows = 1
    for d in orig_shape[:-1]:
        rows *= int(d)

    if vmem_limit_bytes is None:
        vmem_limit_bytes = _default_vmem_limit()
    vmem_limit_bytes = int(vmem_limit_bytes)

    x2d = x.reshape(rows, C)
    w32 = weight.astype(jnp.float32)            # hoist the cast out of the kernel

    # ---- lane packing: fold g rows into the 128-lane axis when it is free to do so ----
    if C < 128 and 128 % C == 0 and rows % (128 // C) == 0:
        g = 128 // C                            # fully lane-dense blocks, free reshape
    else:
        g = 1                                   # C >= 128, ragged C, or rows not divisible
    L = g * C
    rows_p = rows // g                          # packed rows (exact, no padding needed)

    itemsize = jnp.dtype(x.dtype).itemsize
    sub = max(8, 32 // itemsize)                # sublane multiple: 8 f32 / 16 bf16 / 32 int8

    # ---- tile selection with explicit VMEM accounting ----
    # double-buffered in + out blocks (itemsize each) + ~6 live f32 temporaries per row.
    per_row_bytes = L * (4 * itemsize + 24)
    if tile_rows is None:
        budget = (vmem_limit_bytes * 3) // 5
        target_tile = max(sub, (budget // per_row_bytes) // sub * sub)
    else:
        target_tile = max(sub, _round_up(int(tile_rows), sub))
    target_tile = min(target_tile, _round_up(rows_p, sub))

    multicore = _is_multicore_chip()

    # grid first, tile second -> tail padding never exceeds one sub-multiple per block,
    # and the ragged last block is handled in-kernel (no jnp.pad / output slice).
    grid_n = _cdiv(rows_p, target_tile)
    if multicore:
        if grid_n == 1 and rows_p >= 2 * sub:
            grid_n = 2                           # shard across v7x's two TensorCores
        elif grid_n > 1 and grid_n % 2 == 1:
            grid_n += 1                          # avoid a 2:1 core imbalance
    tile = max(sub, _round_up(_cdiv(rows_p, grid_n), sub))
    grid_n = _cdiv(rows_p, tile)
    if grid_n == 1:
        tile = rows_p                            # exact single block (always legal)

    xk = x2d.reshape(rows_p, L)                  # contiguous rows -> free reshape
    wk = jnp.tile(w32, g).reshape(1, L)          # weight repeated once per packed segment

    inv_C = 1.0 / C
    eps = 1e-5

    in_arrays = [xk, wk]
    in_specs = [
        pl.BlockSpec((tile, L), lambda i: (i, 0)),
        # constant index_map -> tiny tile is fetched once and stays resident
        pl.BlockSpec((1, L), lambda i: (0, 0)),
    ]
    if g > 1:
        # Block-diagonal 0/1 matrix with g blocks of ones(C, C): x @ M yields each
        # segment's sum already broadcast across its C lanes (no in-kernel relayout).
        # Built once here (hoisted out of the kernel) and kept resident in VMEM.
        seg = jnp.arange(L, dtype=jnp.int32) // C
        Mseg = (seg[:, None] == seg[None, :]).astype(jnp.float32)
        in_arrays.append(Mseg)
        in_specs.append(pl.BlockSpec((L, L), lambda i: (0, 0)))

    def kernel(*refs):
        if g > 1:
            x_ref, w_ref, m_ref, o_ref = refs
        else:
            x_ref, w_ref, o_ref = refs

        xf = x_ref[...].astype(jnp.float32)
        w = w_ref[...]                           # already f32 (cast hoisted to wrapper)

        if g > 1:
            M = m_ref[...]                       # resident (L, L) f32 block-diagonal
            # Two-pass, mean-centered variance via segmented sums on the idle MXU.
            s1 = jnp.dot(xf, M, precision=jax.lax.Precision.HIGH,
                         preferred_element_type=jnp.float32)
            mean = s1 * inv_C                    # per-segment mean, lane-broadcast
            d = xf - mean
            s2 = jnp.dot(d * d, M, precision=jax.lax.Precision.HIGH,
                         preferred_element_type=jnp.float32)
        else:
            mean = jnp.sum(xf, axis=-1, keepdims=True) * inv_C
            d = xf - mean
            s2 = jnp.sum(d * d, axis=-1, keepdims=True)

        var = s2 * inv_C                         # biased (ddof=0), mean-centered
        inv = jax.lax.rsqrt(var + eps)

        # BiasFree: the output uses the *uncentered* x, only the variance is centered.
        o_ref[...] = (xf * inv * w).astype(o_ref.dtype)

    mm_flops = 4 * rows_p * L * L if g > 1 else 0
    cost = pl.CostEstimate(
        flops=int(mm_flops + 8 * rows * C),
        transcendentals=int(rows),
        bytes_accessed=int(2 * rows * C * itemsize + 4 * L + (4 * L * L if g > 1 else 0)),
    )

    out = pl.pallas_call(
        kernel,
        out_shape=jax.ShapeDtypeStruct((rows_p, L), x.dtype),
        grid_spec=pltpu.PrefetchScalarGridSpec(
            num_scalar_prefetch=0,
            grid=(grid_n,),
            in_specs=in_specs,
            out_specs=pl.BlockSpec((tile, L), lambda i: (i, 0)),
        ),
        compiler_params=pltpu.CompilerParams(
            dimension_semantics=("parallel",),
            vmem_limit_bytes=vmem_limit_bytes,
        ),
        cost_estimate=cost,
    )(*in_arrays)

    # rows_p * L == rows * C exactly -> free reshape, no slicing, no extra HBM pass.
    return out.reshape(orig_shape)


def _reference(x, weight):
    x32 = x.astype(jnp.float32)
    var = jnp.var(x32, axis=-1, keepdims=True)          # biased (ddof=0)
    return (x32 / jnp.sqrt(var + 1e-5) * weight.astype(jnp.float32)).astype(x.dtype)


if __name__ == "__main__":
    key = jax.random.PRNGKey(0)
    k1, k2, k3, k4, k5, k6, k7 = jax.random.split(key, 7)

    # Case 1: token-major layout, C=48 (does not divide 128 -> general lane path).
    x1 = jax.random.normal(k1, (2, 64, 48), dtype=jnp.float32)
    w1 = 1.0 + 0.1 * jax.random.normal(k2, (48,), dtype=jnp.float32)
    o1 = jax.block_until_ready(biasfree_layernorm(x1, w1))
    r1 = _reference(x1, w1)
    assert o1.shape == x1.shape
    assert jnp.allclose(o1, r1, atol=1e-4, rtol=1e-4)

    # Case 2: NHWC feature map, C=32 (divides 128 -> lane-packed MXU path).
    x2 = jax.random.normal(k3, (2, 8, 16, 32), dtype=jnp.float32)
    w2 = jnp.ones((32,), dtype=jnp.float32)   # matches nn.Parameter(torch.ones(C)) init
    o2 = jax.block_until_ready(biasfree_layernorm(x2, w2))
    r2 = _reference(x2, w2)
    assert o2.shape == x2.shape
    assert jnp.allclose(o2, r2, atol=1e-4, rtol=1e-4)

    # Case 2b: large DC offset -> exercises the mean-centered (cancellation-safe) variance.
    x2b = x2 + 100.0
    o2b = jax.block_until_ready(biasfree_layernorm(x2b, w2))
    r2b = _reference(x2b, w2)
    assert jnp.allclose(o2b, r2b, atol=2e-3, rtol=2e-4)

    # Case 3: bf16 activations through the lane-packed path.
    x3 = jax.random.normal(k4, (2, 64, 32), dtype=jnp.bfloat16)
    w3 = jnp.ones((32,), dtype=jnp.bfloat16)
    o3 = jax.block_until_ready(biasfree_layernorm(x3, w3))
    r3 = _reference(x3, w3)
    assert o3.shape == x3.shape
    assert jnp.allclose(o3.astype(jnp.float32), r3.astype(jnp.float32),
                        atol=3e-2, rtol=3e-2)

    # Case 4: ragged last block in the general path (rows=111 not divisible by tile=16).
    x4 = jax.random.normal(k5, (3, 37, 48), dtype=jnp.float32)
    w4 = 1.0 + 0.1 * jax.random.normal(k6, (48,), dtype=jnp.float32)
    o4 = jax.block_until_ready(biasfree_layernorm(x4, w4, tile_rows=16))
    r4 = _reference(x4, w4)
    assert o4.shape == x4.shape
    assert jnp.allclose(o4, r4, atol=1e-4, rtol=1e-4)

    # Case 5: ragged last block in the lane-packed path (rows_p=25 with tile=8).
    x5 = jax.random.normal(k7, (2, 50, 32), dtype=jnp.float32)
    w5 = jnp.ones((32,), dtype=jnp.float32)
    o5 = jax.block_until_ready(biasfree_layernorm(x5, w5, tile_rows=8))
    r5 = _reference(x5, w5)
    assert o5.shape == x5.shape
    assert jnp.allclose(o5, r5, atol=1e-4, rtol=1e-4)

    print("KERNEL_OK")
</pallas_src>

<mosaic_0001>
module attributes {stable_mosaic.version = 11 : i64} {
  func.func @kernel(%arg0: i32, %arg1: memref<128x48xf32, #tpu.memory_space<vmem>>, %arg2: memref<1x48xf32, #tpu.memory_space<vmem>>, %arg3: memref<128x48xf32, #tpu.memory_space<vmem>>) attributes {dimension_semantics = [#tpu.dimension_semantics<parallel>], iteration_bounds = array<i64: 1>, scalar_prefetch = 0 : i64, scratch_operands = 0 : i64, tpu.core_type = #tpu.core_type<tc>, window_params = [{transform_indices = @transform_0, window_bounds = array<i64: 128, 48>}, {pipeline_mode = #tpu.pipeline_mode<synchronous>, transform_indices = @transform_1, window_bounds = array<i64: 1, 48>}, {transform_indices = @transform_2, window_bounds = array<i64: 128, 48>}]} {
    %c0 = arith.constant 0 : index
    %c0_0 = arith.constant 0 : index
    %0 = vector.load %arg1[%c0, %c0_0] : memref<128x48xf32, #tpu.memory_space<vmem>>, vector<128x48xf32>
    %c0_1 = arith.constant 0 : index
    %c0_2 = arith.constant 0 : index
    %1 = vector.load %arg2[%c0_1, %c0_2] : memref<1x48xf32, #tpu.memory_space<vmem>>, vector<1x48xf32>
    %cst = arith.constant dense<0.000000e+00> : vector<128xf32>
    %2 = vector.multi_reduction <add>, %0, %cst [1] : vector<128x48xf32> to vector<128xf32>
    %3 = vector.shape_cast %2 : vector<128xf32> to vector<128x1xf32>
    %cst_3 = arith.constant 0.020833334 : f32
    %4 = vector.broadcast %cst_3 : f32 to vector<128x1xf32>
    %5 = arith.mulf %3, %4 : vector<128x1xf32>
    %6 = vector.broadcast %5 : vector<128x1xf32> to vector<128x48xf32>
    %7 = arith.subf %0, %6 : vector<128x48xf32>
    %8 = arith.mulf %7, %7 : vector<128x48xf32>
    %cst_4 = arith.constant dense<0.000000e+00> : vector<128xf32>
    %9 = vector.multi_reduction <add>, %8, %cst_4 [1] : vector<128x48xf32> to vector<128xf32>
    %10 = vector.shape_cast %9 : vector<128xf32> to vector<128x1xf32>
    %cst_5 = arith.constant 0.020833334 : f32
    %11 = vector.broadcast %cst_5 : f32 to vector<128x1xf32>
    %12 = arith.mulf %10, %11 : vector<128x1xf32>
    %cst_6 = arith.constant 9.99999974E-6 : f32
    %13 = vector.broadcast %cst_6 : f32 to vector<128x1xf32>
    %14 = arith.addf %12, %13 : vector<128x1xf32>
    %15 = math.rsqrt %14 : vector<128x1xf32>
    %16 = vector.broadcast %15 : vector<128x1xf32> to vector<128x48xf32>
    %17 = arith.mulf %0, %16 : vector<128x48xf32>
    %18 = vector.broadcast %1 : vector<1x48xf32> to vector<128x48xf32>
    %19 = arith.mulf %17, %18 : vector<128x48xf32>
    %c0_7 = arith.constant 0 : index
    %c0_8 = arith.constant 0 : index
    %20 = vector.load %arg3[%c0_7, %c0_8] : memref<128x48xf32, #tpu.memory_space<vmem>>, vector<128x48xf32>
    tpu.vector_store %arg3[%c0_7, %c0_8], %19 {strides = array<i32>} : memref<128x48xf32, #tpu.memory_space<vmem>>, vector<128x48xf32>,
    return
  }
  func.func @transform_0(%arg0: i32) -> (i32, i32) {
    %c0_i32 = arith.constant 0 : i32
    %c0_i32_0 = arith.constant 0 : i32
    return %arg0, %c0_i32 : i32, i32
  }
  func.func @transform_1(%arg0: i32) -> (i32, i32) {
    %c0_i32 = arith.constant 0 : i32
    %c0_i32_0 = arith.constant 0 : i32
    %c0_i32_1 = arith.constant 0 : i32
    return %c0_i32, %c0_i32_0 : i32, i32
  }
  func.func @transform_2(%arg0: i32) -> (i32, i32) {
    %c0_i32 = arith.constant 0 : i32
    %c0_i32_0 = arith.constant 0 : i32
    return %arg0, %c0_i32 : i32, i32
  }
}

</mosaic_0001>

<bundles_post_ra>
// kernel: tpu_custom_call.1
= control target key start
LH: loop header
LB: loop body
LE: loop exit
PB: predicated region body
PF: predicated region fallthrough
CT: control target
= control target key end

     0   :  { %vm28_vm0 = vcmask 392192   ;;  %s572_s0 = inlined_call_operand.vmem [shape: f32[128,48], index: 0, kind: input, shape index: {}]   ;;  %s573_s1 = inlined_call_operand.vmem [shape: f32[1,48], index: 1, kind: input, shape index: {}]   ;;  %s574_s2 = inlined_call_operand.vmem [shape: f32[128,48], index: 2, kind: output, shape index: {}]  }
   0x1   :  { %v330_v0 = vld [vmem:[%s572_s0] sm:$0xff]  ;;  %v335_v1 = vld [vmem:[%s572_s0 + $0x10] sm:$0xff]  ;;  %v340_v2 = vld [vmem:[%s572_s0 + $0x8] sm:$0xff] }
   0x2   :  { %v29_v3 = vsel %vm28_vm0, %v330_v0, 0.0  ;;  %v35_v4 = vsel %vm28_vm0, %v335_v1, 0.0  ;;  %v349_v5 = vld [vmem:[%s572_s0 + $0x18] sm:$0xff]  ;;  %v32_v6 = vsel %vm28_vm0, %v340_v2, 0.0  ;;  %v358_v8 = vld [vmem:[%s572_s0 + $0x28] sm:$0xff]  ;;  %v363_v9 = vld [vmem:[%s572_s0 + $0x20] sm:$0xff] }
   0x3   :  { %30 = vadd.xlane.f32.xlu0 %v29_v3  ;;  %36 = vadd.xlane.f32.xlu1 %v35_v4  ;;  %v38_v7 = vsel %vm28_vm0, %v349_v5, 0.0  ;;  %v44_v10 = vsel %vm28_vm0, %v358_v8, 0.0  ;;  %v41_v11 = vsel %vm28_vm0, %v363_v9, 0.0  ;;  %v372_v12 = vld [vmem:[%s572_s0 + $0x38] sm:$0xff]  ;;  %v377_v13 = vld [vmem:[%s572_s0 + $0x30] sm:$0xff]  ;;  %v386_v16 = vld [vmem:[%s572_s0 + $0x48] sm:$0xff] }
   0x4   :  { %v50_v14 = vsel %vm28_vm0, %v372_v12, 0.0  ;;  %v47_v15 = vsel %vm28_vm0, %v377_v13, 0.0  ;;  %v391_v17 = vld [vmem:[%s572_s0 + $0x40] sm:$0xff]  ;;  %v56_v18 = vsel %vm28_vm0, %v386_v16, 0.0  ;;  %v400_v20 = vld [vmem:[%s572_s0 + $0x58] sm:$0xff]  ;;  %v405_v21 = vld [vmem:[%s572_s0 + $0x50] sm:$0xff] }
   0x5   :  { %v53_v19 = vsel %vm28_vm0, %v391_v17, 0.0  ;;  %v62_v22 = vsel %vm28_vm0, %v400_v20, 0.0  ;;  %v59_v23 = vsel %vm28_vm0, %v405_v21, 0.0  ;;  %v414_v24 = vld [vmem:[%s572_s0 + $0x68] sm:$0xff]  ;;  %v419_v25 = vld [vmem:[%s572_s0 + $0x60] sm:$0xff]  ;;  %v428_v28 = vld [vmem:[%s572_s0 + $0x78] sm:$0xff] }
   0x6   :  { %v68_v26 = vsel %vm28_vm0, %v414_v24, 0.0  ;;  %v65_v27 = vsel %vm28_vm0, %v419_v25, 0.0  ;;  %v433_v29 = vld [vmem:[%s572_s0 + $0x70] sm:$0xff]  ;;  %v74_v30 = vsel %vm28_vm0, %v428_v28, 0.0 }
   0x7   :  { %33 = vadd.xlane.f32.xlu0 %v32_v6  ;;  %39 = vadd.xlane.f32.xlu1 %v38_v7  ;;  %v71_v31 = vsel %vm28_vm0, %v433_v29, 0.0 }
   0xb   :  { %45 = vadd.xlane.f32.xlu1 %v44_v10  ;;  %42 = vadd.xlane.f32.xlu0 %v41_v11 }
   0xf   :  { %51 = vadd.xlane.f32.xlu1 %v50_v14  ;;  %48 = vadd.xlane.f32.xlu0 %v47_v15 }
  0x13   :  { %57 = vadd.xlane.f32.xlu1 %v56_v18  ;;  %54 = vadd.xlane.f32.xlu0 %v53_v19 }
  0x17   :  { %63 = vadd.xlane.f32.xlu1 %v62_v22  ;;  %60 = vadd.xlane.f32.xlu0 %v59_v23 }
  0x1b   :  { %69 = vadd.xlane.f32.xlu1 %v68_v26  ;;  %66 = vadd.xlane.f32.xlu0 %v65_v27 }
  0x1f   :  { %75 = vadd.xlane.f32.xlu1 %v74_v30  ;;  %72 = vadd.xlane.f32.xlu0 %v71_v31 }
  0x90   :  { %v31_v32 = vpop.xlane.xlu0 %30  ;;  %v37_v33 = vpop.xlane.xlu1 %36 }
  0x91   :  { %v77_v34 = vmul.f32 0.020833334, %v31_v32  ;;  %v79_v35 = vmul.f32 0.020833334, %v37_v33 }
  0x93   :  { %v93_v36 = vsub.f32 %v330_v0, %v77_v34  ;;  %v95_v37 = vsub.f32 %v335_v1, %v79_v35 }
  0x94   :  { %v34_v38 = vpop.xlane.xlu0 %33  ;;  %v40_v39 = vpop.xlane.xlu1 %39 }
  0x95   :  { %v78_v40 = vmul.f32 0.020833334, %v34_v38  ;;  %v80_v41 = vmul.f32 0.020833334, %v40_v39  ;;  %v109_v42 = vmul.f32 %v93_v36, %v93_v36  ;;  %v111_v43 = vmul.f32 %v95_v37, %v95_v37 }
  0x97   :  { %v94_v44 = vsub.f32 %v340_v2, %v78_v40  ;;  %v96_v45 = vsub.f32 %v349_v5, %v80_v41  ;;  %v125_v46 = vsel %vm28_vm0, %v109_v42, 0.0  ;;  %v131_v48 = vsel %vm28_vm0, %v111_v43, 0.0 }
  0x98   :  { %126 = vadd.xlane.f32.xlu0 %v125_v46  ;;  %v46_v47 = vpop.xlane.xlu1 %45  ;;  %v43_v49 = vpop.xlane.xlu0 %42 }
  0x99   :  { %v82_v50 = vmul.f32 0.020833334, %v46_v47  ;;  %v110_v51 = vmul.f32 %v94_v44, %v94_v44  ;;  %v81_v52 = vmul.f32 0.020833334, %v43_v49  ;;  %v112_v53 = vmul.f32 %v96_v45, %v96_v45 }
  0x9b   :  { %v98_v54 = vsub.f32 %v358_v8, %v82_v50  ;;  %v128_v55 = vsel %vm28_vm0, %v110_v51, 0.0  ;;  %v97_v56 = vsub.f32 %v363_v9, %v81_v52  ;;  %v134_v58 = vsel %vm28_vm0, %v112_v53, 0.0 }
  0x9c   :  { %132 = vadd.xlane.f32.xlu0 %v131_v48  ;;  %129 = vadd.xlane.f32.xlu1 %v128_v55  ;;  %v52_v57 = vpop.xlane.xlu1 %51  ;;  %v49_v59 = vpop.xlane.xlu0 %48 }
  0x9d   :  { %v84_v60 = vmul.f32 0.020833334, %v52_v57  ;;  %v83_v61 = vmul.f32 0.020833334, %v49_v59  ;;  %v114_v62 = vmul.f32 %v98_v54, %v98_v54  ;;  %v113_v63 = vmul.f32 %v97_v56, %v97_v56 }
  0x9f   :  { %v100_v3 = vsub.f32 %v372_v12, %v84_v60  ;;  %v99_v4 = vsub.f32 %v377_v13, %v83_v61  ;;  %v137_v6 = vsel %vm28_vm0, %v113_v63, 0.0  ;;  %v140_v10 = vsel %vm28_vm0, %v114_v62, 0.0 }
  0xa0   :  { %135 = vadd.xlane.f32.xlu1 %v134_v58  ;;  %v58_v7 = vpop.xlane.xlu1 %57  ;;  %138 = vadd.xlane.f32.xlu0 %v137_v6  ;;  %v55_v11 = vpop.xlane.xlu0 %54 }
  0xa1   :  { %v86_v14 = vmul.f32 0.020833334, %v58_v7  ;;  %v85_v15 = vmul.f32 0.020833334, %v55_v11  ;;  %v116_v18 = vmul.f32 %v100_v3, %v100_v3  ;;  %v115_v19 = vmul.f32 %v99_v4, %v99_v4 }
  0xa3   :  { %v102_v22 = vsub.f32 %v386_v16, %v86_v14  ;;  %v101_v23 = vsub.f32 %v391_v17, %v85_v15  ;;  %v143_v26 = vsel %vm28_vm0, %v115_v19, 0.0  ;;  %v146_v30 = vsel %vm28_vm0, %v116_v18, 0.0 }
  0xa4   :  { %141 = vadd.xlane.f32.xlu1 %v140_v10  ;;  %v64_v27 = vpop.xlane.xlu1 %63  ;;  %144 = vadd.xlane.f32.xlu0 %v143_v26  ;;  %v61_v31 = vpop.xlane.xlu0 %60 }
  0xa5   :  { %v88_v32 = vmul.f32 0.020833334, %v64_v27  ;;  %v87_v33 = vmul.f32 0.020833334, %v61_v31  ;;  %v118_v34 = vmul.f32 %v102_v22, %v102_v22  ;;  %v117_v35 = vmul.f32 %v101_v23, %v101_v23 }
  0xa7   :  { %v104_v36 = vsub.f32 %v400_v20, %v88_v32  ;;  %v103_v37 = vsub.f32 %v405_v21, %v87_v33  ;;  %v149_v38 = vsel %vm28_vm0, %v117_v35, 0.0  ;;  %v152_v40 = vsel %vm28_vm0, %v118_v34, 0.0 }
  0xa8   :  { %147 = vadd.xlane.f32.xlu1 %v146_v30  ;;  %v70_v39 = vpop.xlane.xlu1 %69  ;;  %150 = vadd.xlane.f32.xlu0 %v149_v38  ;;  %v67_v41 = vpop.xlane.xlu0 %66 }
  0xa9   :  { %v90_v42 = vmul.f32 0.020833334, %v70_v39  ;;  %v89_v43 = vmul.f32 0.020833334, %v67_v41  ;;  %v120_v44 = vmul.f32 %v104_v36, %v104_v36  ;;  %v119_v45 = vmul.f32 %v103_v37, %v103_v37  ;;  %v474_v36 = vld [vmem:[%s573_s1] ss:$0 sm:$0xff] }
  0xab   :  { %v106_v46 = vsub.f32 %v414_v24, %v90_v42  ;;  %v105_v47 = vsub.f32 %v419_v25, %v89_v43  ;;  %v155_v48 = vsel %vm28_vm0, %v119_v45, 0.0  ;;  %v158_v50 = vsel %vm28_vm0, %v120_v44, 0.0 }
  0xac   :  { %153 = vadd.xlane.f32.xlu1 %v152_v40  ;;  %v76_v49 = vpop.xlane.xlu1 %75  ;;  %156 = vadd.xlane.f32.xlu0 %v155_v48  ;;  %v73_v51 = vpop.xlane.xlu0 %72 }
  0xad   :  { %v92_v52 = vmul.f32 0.020833334, %v76_v49  ;;  %v91_v53 = vmul.f32 0.020833334, %v73_v51  ;;  %v122_v54 = vmul.f32 %v106_v46, %v106_v46  ;;  %v121_v55 = vmul.f32 %v105_v47, %v105_v47 }
  0xaf   :  { %v108_v56 = vsub.f32 %v428_v28, %v92_v52  ;;  %v107_v57 = vsub.f32 %v433_v29, %v91_v53  ;;  %v161_v58 = vsel %vm28_vm0, %v121_v55, 0.0  ;;  %v164_v59 = vsel %vm28_vm0, %v122_v54, 0.0 }
  0xb0   :  { %159 = vadd.xlane.f32.xlu1 %v158_v50  ;;  %162 = vadd.xlane.f32.xlu0 %v161_v58 }
  0xb1   :  { %v124_v60 = vmul.f32 %v108_v56, %v108_v56  ;;  %v123_v61 = vmul.f32 %v107_v57, %v107_v57 }
  0xb3   :  { %v167_v62 = vsel %vm28_vm0, %v123_v61, 0.0  ;;  %v170_v63 = vsel %vm28_vm0, %v124_v60, 0.0 }
  0xb4   :  { %165 = vadd.xlane.f32.xlu1 %v164_v59  ;;  %168 = vadd.xlane.f32.xlu0 %v167_v62 }
  0xb8   :  { %171 = vadd.xlane.f32.xlu1 %v170_v63 }
 0x125   :  { %v127_v3 = vpop.xlane.xlu0 %126 }
 0x126   :  { %v173_v4 = vmul.f32 0.020833334, %v127_v3 }
 0x128   :  { %v189_v6 = vadd.f32 1e-05, %v173_v4 }
 0x129   :  { %v130_v7 = vpop.xlane.xlu1 %129  ;;  %v133_v10 = vpop.xlane.xlu0 %132 }
 0x12a   :  { %280 = vrsqrt.f32 %v189_v6  ;;  %v174_v11 = vmul.f32 0.020833334, %v130_v7  ;;  %v175_v14 = vmul.f32 0.020833334, %v133_v10 }
 0x12c   :  { %v190_v15 = vadd.f32 1e-05, %v174_v11  ;;  %v191_v18 = vadd.f32 1e-05, %v175_v14 }
 0x12d   :  { %v136_v19 = vpop.xlane.xlu1 %135  ;;  %v139_v22 = vpop.xlane.xlu0 %138 }
 0x12e   :  { %282 = vrsqrt.f32 %v190_v15  ;;  %v176_v23 = vmul.f32 0.020833334, %v136_v19  ;;  %v177_v26 = vmul.f32 0.020833334, %v139_v22 }
 0x12f   :  { %284 = vrsqrt.f32 %v191_v18 }
 0x130   :  { %v192_v27 = vadd.f32 1e-05, %v176_v23  ;;  %v193_v30 = vadd.f32 1e-05, %v177_v26 }
 0x131   :  { %v142_v31 = vpop.xlane.xlu1 %141  ;;  %v145_v32 = vpop.xlane.xlu0 %144 }
 0x132   :  { %286 = vrsqrt.f32 %v192_v27  ;;  %v178_v33 = vmul.f32 0.020833334, %v142_v31  ;;  %v179_v34 = vmul.f32 0.020833334, %v145_v32 }
 0x133   :  { %288 = vrsqrt.f32 %v193_v30 }
 0x134   :  { %v281_v35 = vpop.eup %280  ;;  %v194_v37 = vadd.f32 1e-05, %v178_v33  ;;  %v195_v38 = vadd.f32 1e-05, %v179_v34 }
 0x135   :  { %v221_v39 = vmul.f32 %v281_v35, %v330_v0  ;;  %v148_v40 = vpop.xlane.xlu1 %147  ;;  %v151_v41 = vpop.xlane.xlu0 %150 }
 0x136   :  { %290 = vrsqrt.f32 %v194_v37  ;;  %v180_v42 = vmul.f32 0.020833334, %v148_v40  ;;  %v181_v43 = vmul.f32 0.020833334, %v151_v41 }
 0x137   :  { %v243_v44 = vmul.f32 %v474_v36, %v221_v39  ;;  %292 = vrsqrt.f32 %v195_v38 }
 0x138   :  { %v283_v45 = vpop.eup %282  ;;  %v196_v46 = vadd.f32 1e-05, %v180_v42  ;;  %v197_v47 = vadd.f32 1e-05, %v181_v43 }
 0x139   :  { %v285_v48 = vpop.eup %284  ;;  %259 = vst.msk [vmem:[%s574_s2] sm:$0xff] %vm28_vm0, %v243_v44  ;;  %v222_v49 = vmul.f32 %v283_v45, %v340_v2  ;;  %v154_v0 = vpop.xlane.xlu1 %153 }
 0x13a   :  { %v157_v50 = vpop.xlane.xlu0 %156  ;;  %v223_v51 = vmul.f32 %v285_v48, %v335_v1  ;;  %294 = vrsqrt.f32 %v196_v46  ;;  %v182_v52 = vmul.f32 0.020833334, %v154_v0 }
 0x13b   :  { %v183_v53 = vmul.f32 0.020833334, %v157_v50  ;;  %v244_v54 = vmul.f32 %v474_v36, %v222_v49  ;;  %296 = vrsqrt.f32 %v197_v47 }
 0x13c   :  { %v287_v55 = vpop.eup %286  ;;  %v245_v56 = vmul.f32 %v474_v36, %v223_v51  ;;  %v198_v57 = vadd.f32 1e-05, %v182_v52 }
 0x13d   :  { %v199_v58 = vadd.f32 1e-05, %v183_v53  ;;  %v289_v59 = vpop.eup %288  ;;  %260 = vst.msk [vmem:[%s574_s2 + $0x8] sm:$0xff] %vm28_vm0, %v244_v54  ;;  %v224_v2 = vmul.f32 %v287_v55, %v349_v5  ;;  %v160_v1 = vpop.xlane.xlu1 %159 }
 0x13e   :  { %v163_v60 = vpop.xlane.xlu0 %162  ;;  %261 = vst.msk [vmem:[%s574_s2 + $0x10] sm:$0xff] %vm28_vm0, %v245_v56  ;;  %v225_v61 = vmul.f32 %v289_v59, %v363_v9  ;;  %298 = vrsqrt.f32 %v198_v57  ;;  %v184_v62 = vmul.f32 0.020833334, %v160_v1 }
 0x13f   :  { %v185_v63 = vmul.f32 0.020833334, %v163_v60  ;;  %v246_v3 = vmul.f32 %v474_v36, %v224_v2  ;;  %300 = vrsqrt.f32 %v199_v58 }
 0x140   :  { %v291_v4 = vpop.eup %290  ;;  %v247_v6 = vmul.f32 %v474_v36, %v225_v61  ;;  %v200_v7 = vadd.f32 1e-05, %v184_v62 }
 0x141   :  { %v201_v5 = vadd.f32 1e-05, %v185_v63  ;;  %v293_v10 = vpop.eup %292  ;;  %262 = vst.msk [vmem:[%s574_s2 + $0x18] sm:$0xff] %vm28_vm0, %v246_v3  ;;  %v226_v11 = vmul.f32 %v291_v4, %v358_v8  ;;  %v166_v9 = vpop.xlane.xlu1 %165 }
 0x142   :  { %v169_v14 = vpop.xlane.xlu0 %168  ;;  %263 = vst.msk [vmem:[%s574_s2 + $0x20] sm:$0xff] %vm28_vm0, %v247_v6  ;;  %v227_v15 = vmul.f32 %v293_v10, %v377_v13  ;;  %302 = vrsqrt.f32 %v200_v7  ;;  %v186_v18 = vmul.f32 0.020833334, %v166_v9 }
 0x143   :  { %v187_v19 = vmul.f32 0.020833334, %v169_v14  ;;  %v248_v22 = vmul.f32 %v474_v36, %v226_v11  ;;  %304 = vrsqrt.f32 %v201_v5 }
 0x144   :  { %v295_v23 = vpop.eup %294  ;;  %v249_v26 = vmul.f32 %v474_v36, %v227_v15  ;;  %v202_v27 = vadd.f32 1e-05, %v186_v18 }
 0x145   :  { %v203_v8 = vadd.f32 1e-05, %v187_v19  ;;  %v297_v30 = vpop.eup %296  ;;  %264 = vst.msk [vmem:[%s574_s2 + $0x28] sm:$0xff] %vm28_vm0, %v248_v22  ;;  %v228_v31 = vmul.f32 %v295_v23, %v372_v12  ;;  %v172_v13 = vpop.xlane.xlu1 %171 }
 0x146   :  { %265 = vst.msk [vmem:[%s574_s2 + $0x30] sm:$0xff] %vm28_vm0, %v249_v26  ;;  %v229_v32 = vmul.f32 %v297_v30, %v391_v17  ;;  %306 = vrsqrt.f32 %v202_v27  ;;  %v188_v33 = vmul.f32 0.020833334, %v172_v13 }
 0x147   :  { %v250_v34 = vmul.f32 %v474_v36, %v228_v31  ;;  %308 = vrsqrt.f32 %v203_v8 }
 0x148   :  { %v299_v35 = vpop.eup %298  ;;  %v251_v37 = vmul.f32 %v474_v36, %v229_v32  ;;  %v204_v38 = vadd.f32 1e-05, %v188_v33 }
 0x149   :  { %v301_v39 = vpop.eup %300  ;;  %266 = vst.msk [vmem:[%s574_s2 + $0x38] sm:$0xff] %vm28_vm0, %v250_v34  ;;  %v230_v12 = vmul.f32 %v299_v35, %v386_v16 }
 0x14a   :  { %267 = vst.msk [vmem:[%s574_s2 + $0x40] sm:$0xff] %vm28_vm0, %v251_v37  ;;  %v231_v17 = vmul.f32 %v301_v39, %v405_v21  ;;  %310 = vrsqrt.f32 %v204_v38 }
 0x14b   :  { %v252_v40 = vmul.f32 %v474_v36, %v230_v12 }
 0x14c   :  { %v303_v41 = vpop.eup %302  ;;  %v253_v42 = vmul.f32 %v474_v36, %v231_v17 }
 0x14d   :  { %v305_v43 = vpop.eup %304  ;;  %268 = vst.msk [vmem:[%s574_s2 + $0x48] sm:$0xff] %vm28_vm0, %v252_v40  ;;  %v232_v16 = vmul.f32 %v303_v41, %v400_v20 }
 0x14e   :  { %269 = vst.msk [vmem:[%s574_s2 + $0x50] sm:$0xff] %vm28_vm0, %v253_v42  ;;  %v233_v21 = vmul.f32 %v305_v43, %v419_v25 }
 0x14f   :  { %v254_v44 = vmul.f32 %v474_v36, %v232_v16 }
 0x150   :  { %v307_v45 = vpop.eup %306  ;;  %v255_v46 = vmul.f32 %v474_v36, %v233_v21 }
 0x151   :  { %v309_v47 = vpop.eup %308  ;;  %270 = vst.msk [vmem:[%s574_s2 + $0x58] sm:$0xff] %vm28_vm0, %v254_v44  ;;  %v234_v20 = vmul.f32 %v307_v45, %v414_v24 }
 0x152   :  { %271 = vst.msk [vmem:[%s574_s2 + $0x60] sm:$0xff] %vm28_vm0, %v255_v46  ;;  %v235_v25 = vmul.f32 %v309_v47, %v433_v29 }
 0x153   :  { %v256_v48 = vmul.f32 %v474_v36, %v234_v20 }
 0x154   :  { %v311_v49 = vpop.eup %310  ;;  %v257_v0 = vmul.f32 %v474_v36, %v235_v25 }
 0x155   :  { %272 = vst.msk [vmem:[%s574_s2 + $0x68] sm:$0xff] %vm28_vm0, %v256_v48  ;;  %v236_v50 = vmul.f32 %v311_v49, %v428_v28 }
 0x156   :  { %273 = vst.msk [vmem:[%s574_s2 + $0x70] sm:$0xff] %vm28_vm0, %v257_v0 }
 0x157   :  { %v258_v24 = vmul.f32 %v474_v36, %v236_v50 }
 0x159   :  { %274 = vst.msk [vmem:[%s574_s2 + $0x78] sm:$0xff] %vm28_vm0, %v258_v24 }

</bundles_post_ra>
